<compile_context>
chip_gen: v5e
topology: v5e:2x2
jax: 0.10.0
libtpu: 0.0.40
codegen_flags: <defaults>
</compile_context>

<pallas_src>
import functools
import math

import jax
import jax.numpy as jnp
from jax.experimental import pallas as pl
from jax.experimental.pallas import tpu as pltpu


_PARAM_ORDER = (
    "wq", "bq", "wk", "bk", "wv", "bv", "wo", "bo",
    "ln1_g", "ln1_b", "w1", "b1", "w2", "b2", "ln2_g", "ln2_b",
)


def _layer_norm(x, gamma, beta, eps):
    # PyTorch LayerNorm: biased variance over the last (lane) axis.
    mu = jnp.mean(x, axis=-1, keepdims=True)
    xc = x - mu
    var = jnp.mean(xc * xc, axis=-1, keepdims=True)
    return xc * jax.lax.rsqrt(var + eps) * gamma + beta


def _transformer_layer_kernel(
    x_ref, mask_ref,
    wq_ref, bq_ref, wk_ref, bk_ref, wv_ref, bv_ref,
    wo_ref, bo_ref, ln1g_ref, ln1b_ref,
    w1_ref, b1_ref, w2_ref, b2_ref, ln2g_ref, ln2b_ref,
    o_ref,
    *, n_heads, ln_eps):
    TB, S, H = x_ref.shape
    dh = H // n_heads
    inv_sqrt_dh = 1.0 / math.sqrt(dh)

    # Collapse (TB, S, H) -> (TB*S, H): layout-safe (major dims only), lets the
    # QKV / output / FFN matmuls see TB*S rows at once.
    x = x_ref[...].reshape(TB * S, H)

    # ---- QKV projections (MXU) ----
    q = jnp.dot(x, wq_ref[...], preferred_element_type=jnp.float32) + bq_ref[...]
    k = jnp.dot(x, wk_ref[...], preferred_element_type=jnp.float32) + bk_ref[...]
    v = jnp.dot(x, wv_ref[...], preferred_element_type=jnp.float32) + bv_ref[...]

    # ---- multi-head self-attention ----
    # Softmax reductions run along the lane axis (S on lanes); small static
    # python loops over (batch-in-tile, head) are traced out.
    ctx_rows = []
    for b in range(TB):
        mask_b = mask_ref[b]                       # (S, S) additive mask
        rs = slice(b * S, (b + 1) * S)
        qb, kb, vb = q[rs], k[rs], v[rs]           # (S, H) each
        heads = []
        for h in range(n_heads):
            cs = slice(h * dh, (h + 1) * dh)
            qh, kh, vh = qb[:, cs], kb[:, cs], vb[:, cs]   # (S, dh)
            # scores = qh @ kh^T  (contract last dims; no explicit transpose)
            scores = jax.lax.dot_general(
                qh, kh, (((1,), (1,)), ((), ())),
                preferred_element_type=jnp.float32) * inv_sqrt_dh
            scores = scores + mask_b
            m = jnp.max(scores, axis=-1, keepdims=True)
            e = jnp.exp(scores - m)
            p = e / jnp.sum(e, axis=-1, keepdims=True)
            heads.append(jnp.dot(p, vh, preferred_element_type=jnp.float32))
        ctx_b = heads[0] if n_heads == 1 else jnp.concatenate(heads, axis=-1)
        ctx_rows.append(ctx_b)                     # (S, H)
    ctx = ctx_rows[0] if TB == 1 else jnp.concatenate(ctx_rows, axis=0)  # (TB*S, H)

    # ---- attention output projection + residual + LayerNorm ----
    attn = jnp.dot(ctx, wo_ref[...], preferred_element_type=jnp.float32) + bo_ref[...]
    h1 = _layer_norm(attn + x, ln1g_ref[...], ln1b_ref[...], ln_eps)

    # ---- point-wise feed-forward (swish) + residual + LayerNorm ----
    ff = jnp.dot(h1, w1_ref[...], preferred_element_type=jnp.float32) + b1_ref[...]
    ff = ff * jax.nn.sigmoid(ff)                   # swish: EUP sigmoid, VPU mul
    ff = jnp.dot(ff, w2_ref[...], preferred_element_type=jnp.float32) + b2_ref[...]
    out = _layer_norm(ff + h1, ln2g_ref[...], ln2b_ref[...], ln_eps)

    o_ref[...] = out.reshape(TB, S, H).astype(o_ref.dtype)


def transformer_layer_forward(x, mask, params, *, n_heads, ln_eps=1e-12, tb=1):
    """x: [B, S, H], mask: [B, S, S] additive, params: dict (transposed weights)."""
    B, S, H = x.shape
    assert B % tb == 0, "batch must be divisible by the batch tile"
    param_list = [params[k] for k in _PARAM_ORDER]

    kernel = functools.partial(
        _transformer_layer_kernel, n_heads=n_heads, ln_eps=ln_eps)

    in_specs = [
        pl.BlockSpec((tb, S, H), lambda b: (b, 0, 0)),      # hidden_states tile
        pl.BlockSpec((tb, S, S), lambda b: (b, 0, 0)),      # additive attention mask
    ] + [
        # Weights/biases: full arrays, constant index_map -> stay resident in VMEM.
        pl.BlockSpec(p.shape, lambda b, n=p.ndim: (0,) * n)
        for p in param_list
    ]

    return pl.pallas_call(
        kernel,
        out_shape=jax.ShapeDtypeStruct((B, S, H), jnp.float32),
        grid_spec=pltpu.PrefetchScalarGridSpec(
            num_scalar_prefetch=0,
            grid=(B // tb,),
            in_specs=in_specs,
            out_specs=pl.BlockSpec((tb, S, H), lambda b: (b, 0, 0)),
        ),
        compiler_params=pltpu.CompilerParams(
            dimension_semantics=("parallel",)),
    )(x, mask, *param_list)


def _reference(x, mask, params, *, n_heads, ln_eps=1e-12):
    """Pure-JAX reference (mirrors the PyTorch forward, inference mode)."""
    hp = jax.lax.Precision.HIGHEST
    B, S, H = x.shape
    dh = H // n_heads

    q = jnp.dot(x, params["wq"], precision=hp) + params["bq"]
    k = jnp.dot(x, params["wk"], precision=hp) + params["bk"]
    v = jnp.dot(x, params["wv"], precision=hp) + params["bv"]

    def split(t):  # (B,S,H) -> (B,nh,S,dh)
        return t.reshape(B, S, n_heads, dh).transpose(0, 2, 1, 3)

    qh, kh, vh = split(q), split(k), split(v)
    scores = jnp.einsum("bnsd,bntd->bnst", qh, kh, precision=hp) / math.sqrt(dh)
    scores = scores + mask[:, None, :, :]
    probs = jax.nn.softmax(scores, axis=-1)
    ctx = jnp.einsum("bnst,bntd->bnsd", probs, vh, precision=hp)
    ctx = ctx.transpose(0, 2, 1, 3).reshape(B, S, H)

    def ln(t, g, b):
        mu = jnp.mean(t, axis=-1, keepdims=True)
        tc = t - mu
        var = jnp.mean(tc * tc, axis=-1, keepdims=True)
        return tc * jax.lax.rsqrt(var + ln_eps) * g + b

    attn = jnp.dot(ctx, params["wo"], precision=hp) + params["bo"]
    h1 = ln(attn + x, params["ln1_g"], params["ln1_b"])

    ff = jnp.dot(h1, params["w1"], precision=hp) + params["b1"]
    ff = ff * jax.nn.sigmoid(ff)
    ff = jnp.dot(ff, params["w2"], precision=hp) + params["b2"]
    return ln(ff + h1, params["ln2_g"], params["ln2_b"])


if __name__ == "__main__":
    # Small shapes consistent with the module: batch=2, seq=8, hidden=32,
    # intermediate=64, n_heads=2 (head_dim=16).
    B, S, H, I, NH = 2, 8, 32, 64, 2
    LN_EPS = 1e-12

    key = jax.random.PRNGKey(0)
    ks = jax.random.split(key, 18)

    def lin_w(k, fan_in, shape):
        return (jax.random.normal(k, shape, jnp.float32) / jnp.sqrt(fan_in)).astype(jnp.float32)

    params = {
        "wq": lin_w(ks[0], H, (H, H)), "bq": 0.02 * jax.random.normal(ks[1], (1, H), jnp.float32),
        "wk": lin_w(ks[2], H, (H, H)), "bk": 0.02 * jax.random.normal(ks[3], (1, H), jnp.float32),
        "wv": lin_w(ks[4], H, (H, H)), "bv": 0.02 * jax.random.normal(ks[5], (1, H), jnp.float32),
        "wo": lin_w(ks[6], H, (H, H)), "bo": 0.02 * jax.random.normal(ks[7], (1, H), jnp.float32),
        "ln1_g": 1.0 + 0.1 * jax.random.normal(ks[8], (1, H), jnp.float32),
        "ln1_b": 0.1 * jax.random.normal(ks[9], (1, H), jnp.float32),
        "w1": lin_w(ks[10], H, (H, I)), "b1": 0.02 * jax.random.normal(ks[11], (1, I), jnp.float32),
        "w2": lin_w(ks[12], I, (I, H)), "b2": 0.02 * jax.random.normal(ks[13], (1, H), jnp.float32),
        "ln2_g": 1.0 + 0.1 * jax.random.normal(ks[14], (1, H), jnp.float32),
        "ln2_b": 0.1 * jax.random.normal(ks[15], (1, H), jnp.float32),
    }

    x = jax.random.normal(ks[16], (B, S, H), jnp.float32)
    # Additive causal attention mask (0 where attended, -1e4 where masked).
    causal = jnp.where(
        jnp.arange(S)[None, :] <= jnp.arange(S)[:, None], 0.0, -1.0e4
    ).astype(jnp.float32)
    mask = jnp.broadcast_to(causal, (B, S, S))

    out = transformer_layer_forward(x, mask, params, n_heads=NH, ln_eps=LN_EPS, tb=1)
    out = jax.block_until_ready(out)

    ref = _reference(x, mask, params, n_heads=NH, ln_eps=LN_EPS)
    assert out.shape == (B, S, H)
    assert jnp.allclose(out, ref, atol=2e-3, rtol=2e-3), "mismatch vs reference"

    print("KERNEL_OK")
</pallas_src>

<mosaic_0001>
module attributes {stable_mosaic.version = 11 : i64} {
  func.func @_transformer_layer_kernel(%arg0: i32, %arg1: memref<1x8x32xf32, #tpu.memory_space<vmem>>, %arg2: memref<1x8x8xf32, #tpu.memory_space<vmem>>, %arg3: memref<32x32xf32, #tpu.memory_space<vmem>>, %arg4: memref<1x32xf32, #tpu.memory_space<vmem>>, %arg5: memref<32x32xf32, #tpu.memory_space<vmem>>, %arg6: memref<1x32xf32, #tpu.memory_space<vmem>>, %arg7: memref<32x32xf32, #tpu.memory_space<vmem>>, %arg8: memref<1x32xf32, #tpu.memory_space<vmem>>, %arg9: memref<32x32xf32, #tpu.memory_space<vmem>>, %arg10: memref<1x32xf32, #tpu.memory_space<vmem>>, %arg11: memref<1x32xf32, #tpu.memory_space<vmem>>, %arg12: memref<1x32xf32, #tpu.memory_space<vmem>>, %arg13: memref<32x64xf32, #tpu.memory_space<vmem>>, %arg14: memref<1x64xf32, #tpu.memory_space<vmem>>, %arg15: memref<64x32xf32, #tpu.memory_space<vmem>>, %arg16: memref<1x32xf32, #tpu.memory_space<vmem>>, %arg17: memref<1x32xf32, #tpu.memory_space<vmem>>, %arg18: memref<1x32xf32, #tpu.memory_space<vmem>>, %arg19: memref<1x8x32xf32, #tpu.memory_space<vmem>>) attributes {dimension_semantics = [#tpu.dimension_semantics<parallel>], iteration_bounds = array<i64: 2>, scalar_prefetch = 0 : i64, scratch_operands = 0 : i64, tpu.core_type = #tpu.core_type<tc>, window_params = [{transform_indices = @transform_0, window_bounds = array<i64: 1, 8, 32>}, {transform_indices = @transform_1, window_bounds = array<i64: 1, 8, 8>}, {pipeline_mode = #tpu.pipeline_mode<synchronous>, transform_indices = @transform_2, window_bounds = array<i64: 32, 32>}, {pipeline_mode = #tpu.pipeline_mode<synchronous>, transform_indices = @transform_3, window_bounds = array<i64: 1, 32>}, {pipeline_mode = #tpu.pipeline_mode<synchronous>, transform_indices = @transform_4, window_bounds = array<i64: 32, 32>}, {pipeline_mode = #tpu.pipeline_mode<synchronous>, transform_indices = @transform_5, window_bounds = array<i64: 1, 32>}, {pipeline_mode = #tpu.pipeline_mode<synchronous>, transform_indices = @transform_6, window_bounds = array<i64: 32, 32>}, {pipeline_mode = #tpu.pipeline_mode<synchronous>, transform_indices = @transform_7, window_bounds = array<i64: 1, 32>}, {pipeline_mode = #tpu.pipeline_mode<synchronous>, transform_indices = @transform_8, window_bounds = array<i64: 32, 32>}, {pipeline_mode = #tpu.pipeline_mode<synchronous>, transform_indices = @transform_9, window_bounds = array<i64: 1, 32>}, {pipeline_mode = #tpu.pipeline_mode<synchronous>, transform_indices = @transform_10, window_bounds = array<i64: 1, 32>}, {pipeline_mode = #tpu.pipeline_mode<synchronous>, transform_indices = @transform_11, window_bounds = array<i64: 1, 32>}, {pipeline_mode = #tpu.pipeline_mode<synchronous>, transform_indices = @transform_12, window_bounds = array<i64: 32, 64>}, {pipeline_mode = #tpu.pipeline_mode<synchronous>, transform_indices = @transform_13, window_bounds = array<i64: 1, 64>}, {pipeline_mode = #tpu.pipeline_mode<synchronous>, transform_indices = @transform_14, window_bounds = array<i64: 64, 32>}, {pipeline_mode = #tpu.pipeline_mode<synchronous>, transform_indices = @transform_15, window_bounds = array<i64: 1, 32>}, {pipeline_mode = #tpu.pipeline_mode<synchronous>, transform_indices = @transform_16, window_bounds = array<i64: 1, 32>}, {pipeline_mode = #tpu.pipeline_mode<synchronous>, transform_indices = @transform_17, window_bounds = array<i64: 1, 32>}, {transform_indices = @transform_18, window_bounds = array<i64: 1, 8, 32>}]} {
    %c0 = arith.constant 0 : index
    %c0_0 = arith.constant 0 : index
    %c0_1 = arith.constant 0 : index
    %0 = vector.load %arg1[%c0, %c0_0, %c0_1] : memref<1x8x32xf32, #tpu.memory_space<vmem>>, vector<1x8x32xf32>
    %1 = vector.shape_cast %0 : vector<1x8x32xf32> to vector<8x32xf32>
    %c0_2 = arith.constant 0 : index
    %c0_3 = arith.constant 0 : index
    %2 = vector.load %arg3[%c0_2, %c0_3] : memref<32x32xf32, #tpu.memory_space<vmem>>, vector<32x32xf32>
    %cst = arith.constant dense<0.000000e+00> : vector<8x32xf32>
    %3 = tpu.matmul %1, %2, %cst {dimension_numbers = #tpu.dot_dimension_numbers<[1], [0], [0], [1], [0, 0, 1, 1], [], []>} : vector<8x32xf32>, vector<32x32xf32>, vector<8x32xf32> -> vector<8x32xf32>
    %c0_4 = arith.constant 0 : index
    %c0_5 = arith.constant 0 : index
    %4 = vector.load %arg4[%c0_4, %c0_5] : memref<1x32xf32, #tpu.memory_space<vmem>>, vector<1x32xf32>
    %5 = vector.broadcast %4 : vector<1x32xf32> to vector<8x32xf32>
    %6 = arith.addf %3, %5 : vector<8x32xf32>
    %c0_6 = arith.constant 0 : index
    %c0_7 = arith.constant 0 : index
    %7 = vector.load %arg5[%c0_6, %c0_7] : memref<32x32xf32, #tpu.memory_space<vmem>>, vector<32x32xf32>
    %cst_8 = arith.constant dense<0.000000e+00> : vector<8x32xf32>
    %8 = tpu.matmul %1, %7, %cst_8 {dimension_numbers = #tpu.dot_dimension_numbers<[1], [0], [0], [1], [0, 0, 1, 1], [], []>} : vector<8x32xf32>, vector<32x32xf32>, vector<8x32xf32> -> vector<8x32xf32>
    %c0_9 = arith.constant 0 : index
    %c0_10 = arith.constant 0 : index
    %9 = vector.load %arg6[%c0_9, %c0_10] : memref<1x32xf32, #tpu.memory_space<vmem>>, vector<1x32xf32>
    %10 = vector.broadcast %9 : vector<1x32xf32> to vector<8x32xf32>
    %11 = arith.addf %8, %10 : vector<8x32xf32>
    %c0_11 = arith.constant 0 : index
    %c0_12 = arith.constant 0 : index
    %12 = vector.load %arg7[%c0_11, %c0_12] : memref<32x32xf32, #tpu.memory_space<vmem>>, vector<32x32xf32>
    %cst_13 = arith.constant dense<0.000000e+00> : vector<8x32xf32>
    %13 = tpu.matmul %1, %12, %cst_13 {dimension_numbers = #tpu.dot_dimension_numbers<[1], [0], [0], [1], [0, 0, 1, 1], [], []>} : vector<8x32xf32>, vector<32x32xf32>, vector<8x32xf32> -> vector<8x32xf32>
    %c0_14 = arith.constant 0 : index
    %c0_15 = arith.constant 0 : index
    %14 = vector.load %arg8[%c0_14, %c0_15] : memref<1x32xf32, #tpu.memory_space<vmem>>, vector<1x32xf32>
    %15 = vector.broadcast %14 : vector<1x32xf32> to vector<8x32xf32>
    %16 = arith.addf %13, %15 : vector<8x32xf32>
    %c0_16 = arith.constant 0 : index
    %c0_17 = arith.constant 0 : index
    %c0_18 = arith.constant 0 : index
    %17 = vector.load %arg2[%c0_16, %c0_17, %c0_18] : memref<1x8x8xf32, #tpu.memory_space<vmem>>, vector<1x8x8xf32>
    %18 = vector.shape_cast %17 : vector<1x8x8xf32> to vector<8x8xf32>
    %19 = vector.extract_strided_slice %6 {offsets = [0, 0], sizes = [8, 16], strides = [1, 1]} : vector<8x32xf32> to vector<8x16xf32>
    %20 = vector.extract_strided_slice %11 {offsets = [0, 0], sizes = [8, 16], strides = [1, 1]} : vector<8x32xf32> to vector<8x16xf32>
    %21 = vector.extract_strided_slice %16 {offsets = [0, 0], sizes = [8, 16], strides = [1, 1]} : vector<8x32xf32> to vector<8x16xf32>
    %cst_19 = arith.constant dense<0.000000e+00> : vector<8x8xf32>
    %22 = tpu.matmul %19, %20, %cst_19 {dimension_numbers = #tpu.dot_dimension_numbers<[1], [1], [0], [0], [0, 0, 1, 0], [], []>} : vector<8x16xf32>, vector<8x16xf32>, vector<8x8xf32> -> vector<8x8xf32>
    %cst_20 = arith.constant 2.500000e-01 : f32
    %23 = vector.broadcast %cst_20 : f32 to vector<8x8xf32>
    %24 = arith.mulf %22, %23 : vector<8x8xf32>
    %25 = arith.addf %24, %18 : vector<8x8xf32>
    %cst_21 = arith.constant dense<0xFF800000> : vector<8xf32>
    %26 = vector.multi_reduction <maximumf>, %25, %cst_21 [1] : vector<8x8xf32> to vector<8xf32>
    %27 = vector.shape_cast %26 : vector<8xf32> to vector<8x1xf32>
    %28 = vector.broadcast %27 : vector<8x1xf32> to vector<8x8xf32>
    %29 = arith.subf %25, %28 : vector<8x8xf32>
    %30 = math.exp %29 : vector<8x8xf32>
    %cst_22 = arith.constant dense<0.000000e+00> : vector<8xf32>
    %31 = vector.multi_reduction <add>, %30, %cst_22 [1] : vector<8x8xf32> to vector<8xf32>
    %32 = vector.shape_cast %31 : vector<8xf32> to vector<8x1xf32>
    %33 = vector.broadcast %32 : vector<8x1xf32> to vector<8x8xf32>
    %34 = arith.divf %30, %33 : vector<8x8xf32>
    %cst_23 = arith.constant dense<0.000000e+00> : vector<8x16xf32>
    %35 = tpu.matmul %34, %21, %cst_23 {dimension_numbers = #tpu.dot_dimension_numbers<[1], [0], [0], [1], [0, 0, 1, 1], [], []>} : vector<8x8xf32>, vector<8x16xf32>, vector<8x16xf32> -> vector<8x16xf32>
    %36 = vector.extract_strided_slice %6 {offsets = [0, 16], sizes = [8, 16], strides = [1, 1]} : vector<8x32xf32> to vector<8x16xf32>
    %37 = vector.extract_strided_slice %11 {offsets = [0, 16], sizes = [8, 16], strides = [1, 1]} : vector<8x32xf32> to vector<8x16xf32>
    %38 = vector.extract_strided_slice %16 {offsets = [0, 16], sizes = [8, 16], strides = [1, 1]} : vector<8x32xf32> to vector<8x16xf32>
    %cst_24 = arith.constant dense<0.000000e+00> : vector<8x8xf32>
    %39 = tpu.matmul %36, %37, %cst_24 {dimension_numbers = #tpu.dot_dimension_numbers<[1], [1], [0], [0], [0, 0, 1, 0], [], []>} : vector<8x16xf32>, vector<8x16xf32>, vector<8x8xf32> -> vector<8x8xf32>
    %cst_25 = arith.constant 2.500000e-01 : f32
    %40 = vector.broadcast %cst_25 : f32 to vector<8x8xf32>
    %41 = arith.mulf %39, %40 : vector<8x8xf32>
    %42 = arith.addf %41, %18 : vector<8x8xf32>
    %cst_26 = arith.constant dense<0xFF800000> : vector<8xf32>
    %43 = vector.multi_reduction <maximumf>, %42, %cst_26 [1] : vector<8x8xf32> to vector<8xf32>
    %44 = vector.shape_cast %43 : vector<8xf32> to vector<8x1xf32>
    %45 = vector.broadcast %44 : vector<8x1xf32> to vector<8x8xf32>
    %46 = arith.subf %42, %45 : vector<8x8xf32>
    %47 = math.exp %46 : vector<8x8xf32>
    %cst_27 = arith.constant dense<0.000000e+00> : vector<8xf32>
    %48 = vector.multi_reduction <add>, %47, %cst_27 [1] : vector<8x8xf32> to vector<8xf32>
    %49 = vector.shape_cast %48 : vector<8xf32> to vector<8x1xf32>
    %50 = vector.broadcast %49 : vector<8x1xf32> to vector<8x8xf32>
    %51 = arith.divf %47, %50 : vector<8x8xf32>
    %cst_28 = arith.constant dense<0.000000e+00> : vector<8x16xf32>
    %52 = tpu.matmul %51, %38, %cst_28 {dimension_numbers = #tpu.dot_dimension_numbers<[1], [0], [0], [1], [0, 0, 1, 1], [], []>} : vector<8x8xf32>, vector<8x16xf32>, vector<8x16xf32> -> vector<8x16xf32>
    %53 = tpu.concatenate %35, %52 in 1 : vector<8x16xf32>, vector<8x16xf32> -> vector<8x32xf32>
    %c0_29 = arith.constant 0 : index
    %c0_30 = arith.constant 0 : index
    %54 = vector.load %arg9[%c0_29, %c0_30] : memref<32x32xf32, #tpu.memory_space<vmem>>, vector<32x32xf32>
    %cst_31 = arith.constant dense<0.000000e+00> : vector<8x32xf32>
    %55 = tpu.matmul %53, %54, %cst_31 {dimension_numbers = #tpu.dot_dimension_numbers<[1], [0], [0], [1], [0, 0, 1, 1], [], []>} : vector<8x32xf32>, vector<32x32xf32>, vector<8x32xf32> -> vector<8x32xf32>
    %c0_32 = arith.constant 0 : index
    %c0_33 = arith.constant 0 : index
    %56 = vector.load %arg10[%c0_32, %c0_33] : memref<1x32xf32, #tpu.memory_space<vmem>>, vector<1x32xf32>
    %57 = vector.broadcast %56 : vector<1x32xf32> to vector<8x32xf32>
    %58 = arith.addf %55, %57 : vector<8x32xf32>
    %59 = arith.addf %58, %1 : vector<8x32xf32>
    %c0_34 = arith.constant 0 : index
    %c0_35 = arith.constant 0 : index
    %60 = vector.load %arg11[%c0_34, %c0_35] : memref<1x32xf32, #tpu.memory_space<vmem>>, vector<1x32xf32>
    %c0_36 = arith.constant 0 : index
    %c0_37 = arith.constant 0 : index
    %61 = vector.load %arg12[%c0_36, %c0_37] : memref<1x32xf32, #tpu.memory_space<vmem>>, vector<1x32xf32>
    %cst_38 = arith.constant dense<0.000000e+00> : vector<8xf32>
    %62 = vector.multi_reduction <add>, %59, %cst_38 [1] : vector<8x32xf32> to vector<8xf32>
    %63 = vector.shape_cast %62 : vector<8xf32> to vector<8x1xf32>
    %cst_39 = arith.constant 3.200000e+01 : f32
    %64 = vector.broadcast %cst_39 : f32 to vector<8x1xf32>
    %65 = arith.divf %63, %64 : vector<8x1xf32>
    %66 = vector.broadcast %65 : vector<8x1xf32> to vector<8x32xf32>
    %67 = arith.subf %59, %66 : vector<8x32xf32>
    %68 = arith.mulf %67, %67 : vector<8x32xf32>
    %cst_40 = arith.constant dense<0.000000e+00> : vector<8xf32>
    %69 = vector.multi_reduction <add>, %68, %cst_40 [1] : vector<8x32xf32> to vector<8xf32>
    %70 = vector.shape_cast %69 : vector<8xf32> to vector<8x1xf32>
    %cst_41 = arith.constant 3.200000e+01 : f32
    %71 = vector.broadcast %cst_41 : f32 to vector<8x1xf32>
    %72 = arith.divf %70, %71 : vector<8x1xf32>
    %cst_42 = arith.constant 9.99999996E-13 : f32
    %73 = vector.broadcast %cst_42 : f32 to vector<8x1xf32>
    %74 = arith.addf %72, %73 : vector<8x1xf32>
    %75 = math.rsqrt %74 : vector<8x1xf32>
    %76 = vector.broadcast %75 : vector<8x1xf32> to vector<8x32xf32>
    %77 = arith.mulf %67, %76 : vector<8x32xf32>
    %78 = vector.broadcast %60 : vector<1x32xf32> to vector<8x32xf32>
    %79 = arith.mulf %77, %78 : vector<8x32xf32>
    %80 = vector.broadcast %61 : vector<1x32xf32> to vector<8x32xf32>
    %81 = arith.addf %79, %80 : vector<8x32xf32>
    %c0_43 = arith.constant 0 : index
    %c0_44 = arith.constant 0 : index
    %82 = vector.load %arg13[%c0_43, %c0_44] : memref<32x64xf32, #tpu.memory_space<vmem>>, vector<32x64xf32>
    %cst_45 = arith.constant dense<0.000000e+00> : vector<8x64xf32>
    %83 = tpu.matmul %81, %82, %cst_45 {dimension_numbers = #tpu.dot_dimension_numbers<[1], [0], [0], [1], [0, 0, 1, 1], [], []>} : vector<8x32xf32>, vector<32x64xf32>, vector<8x64xf32> -> vector<8x64xf32>
    %c0_46 = arith.constant 0 : index
    %c0_47 = arith.constant 0 : index
    %84 = vector.load %arg14[%c0_46, %c0_47] : memref<1x64xf32, #tpu.memory_space<vmem>>, vector<1x64xf32>
    %85 = vector.broadcast %84 : vector<1x64xf32> to vector<8x64xf32>
    %86 = arith.addf %83, %85 : vector<8x64xf32>
    %87 = arith.negf %86 : vector<8x64xf32>
    %88 = math.exp %87 : vector<8x64xf32>
    %cst_48 = arith.constant 1.000000e+00 : f32
    %89 = vector.broadcast %cst_48 : f32 to vector<8x64xf32>
    %90 = arith.addf %89, %88 : vector<8x64xf32>
    %91 = arith.divf %89, %90 : vector<8x64xf32>
    %92 = arith.mulf %86, %91 : vector<8x64xf32>
    %c0_49 = arith.constant 0 : index
    %c0_50 = arith.constant 0 : index
    %93 = vector.load %arg15[%c0_49, %c0_50] : memref<64x32xf32, #tpu.memory_space<vmem>>, vector<64x32xf32>
    %cst_51 = arith.constant dense<0.000000e+00> : vector<8x32xf32>
    %94 = tpu.matmul %92, %93, %cst_51 {dimension_numbers = #tpu.dot_dimension_numbers<[1], [0], [0], [1], [0, 0, 1, 1], [], []>} : vector<8x64xf32>, vector<64x32xf32>, vector<8x32xf32> -> vector<8x32xf32>
    %c0_52 = arith.constant 0 : index
    %c0_53 = arith.constant 0 : index
    %95 = vector.load %arg16[%c0_52, %c0_53] : memref<1x32xf32, #tpu.memory_space<vmem>>, vector<1x32xf32>
    %96 = vector.broadcast %95 : vector<1x32xf32> to vector<8x32xf32>
    %97 = arith.addf %94, %96 : vector<8x32xf32>
    %98 = arith.addf %97, %81 : vector<8x32xf32>
    %c0_54 = arith.constant 0 : index
    %c0_55 = arith.constant 0 : index
    %99 = vector.load %arg17[%c0_54, %c0_55] : memref<1x32xf32, #tpu.memory_space<vmem>>, vector<1x32xf32>
    %c0_56 = arith.constant 0 : index
    %c0_57 = arith.constant 0 : index
    %100 = vector.load %arg18[%c0_56, %c0_57] : memref<1x32xf32, #tpu.memory_space<vmem>>, vector<1x32xf32>
    %cst_58 = arith.constant dense<0.000000e+00> : vector<8xf32>
    %101 = vector.multi_reduction <add>, %98, %cst_58 [1] : vector<8x32xf32> to vector<8xf32>
    %102 = vector.shape_cast %101 : vector<8xf32> to vector<8x1xf32>
    %cst_59 = arith.constant 3.200000e+01 : f32
    %103 = vector.broadcast %cst_59 : f32 to vector<8x1xf32>
    %104 = arith.divf %102, %103 : vector<8x1xf32>
    %105 = vector.broadcast %104 : vector<8x1xf32> to vector<8x32xf32>
    %106 = arith.subf %98, %105 : vector<8x32xf32>
    %107 = arith.mulf %106, %106 : vector<8x32xf32>
    %cst_60 = arith.constant dense<0.000000e+00> : vector<8xf32>
    %108 = vector.multi_reduction <add>, %107, %cst_60 [1] : vector<8x32xf32> to vector<8xf32>
    %109 = vector.shape_cast %108 : vector<8xf32> to vector<8x1xf32>
    %cst_61 = arith.constant 3.200000e+01 : f32
    %110 = vector.broadcast %cst_61 : f32 to vector<8x1xf32>
    %111 = arith.divf %109, %110 : vector<8x1xf32>
    %cst_62 = arith.constant 9.99999996E-13 : f32
    %112 = vector.broadcast %cst_62 : f32 to vector<8x1xf32>
    %113 = arith.addf %111, %112 : vector<8x1xf32>
    %114 = math.rsqrt %113 : vector<8x1xf32>
    %115 = vector.broadcast %114 : vector<8x1xf32> to vector<8x32xf32>
    %116 = arith.mulf %106, %115 : vector<8x32xf32>
    %117 = vector.broadcast %99 : vector<1x32xf32> to vector<8x32xf32>
    %118 = arith.mulf %116, %117 : vector<8x32xf32>
    %119 = vector.broadcast %100 : vector<1x32xf32> to vector<8x32xf32>
    %120 = arith.addf %118, %119 : vector<8x32xf32>
    %121 = vector.shape_cast %120 : vector<8x32xf32> to vector<1x8x32xf32>
    %c0_63 = arith.constant 0 : index
    %c0_64 = arith.constant 0 : index
    %c0_65 = arith.constant 0 : index
    %122 = vector.load %arg19[%c0_63, %c0_64, %c0_65] : memref<1x8x32xf32, #tpu.memory_space<vmem>>, vector<1x8x32xf32>
    tpu.vector_store %arg19[%c0_63, %c0_64, %c0_65], %121 {strides = array<i32>} : memref<1x8x32xf32, #tpu.memory_space<vmem>>, vector<1x8x32xf32>,
    return
  }
  func.func @transform_0(%arg0: i32) -> (i32, i32, i32) {
    %c0_i32 = arith.constant 0 : i32
    %c0_i32_0 = arith.constant 0 : i32
    %c0_i32_1 = arith.constant 0 : i32
    return %arg0, %c0_i32, %c0_i32_0 : i32, i32, i32
  }
  func.func @transform_1(%arg0: i32) -> (i32, i32, i32) {
    %c0_i32 = arith.constant 0 : i32
    %c0_i32_0 = arith.constant 0 : i32
    %c0_i32_1 = arith.constant 0 : i32
    return %arg0, %c0_i32, %c0_i32_0 : i32, i32, i32
  }
  func.func @transform_2(%arg0: i32) -> (i32, i32) {
    %c0_i32 = arith.constant 0 : i32
    %c0_i32_0 = arith.constant 0 : i32
    %c0_i32_1 = arith.constant 0 : i32
    return %c0_i32, %c0_i32_0 : i32, i32
  }
  func.func @transform_3(%arg0: i32) -> (i32, i32) {
    %c0_i32 = arith.constant 0 : i32
    %c0_i32_0 = arith.constant 0 : i32
    %c0_i32_1 = arith.constant 0 : i32
    return %c0_i32, %c0_i32_0 : i32, i32
  }
  func.func @transform_4(%arg0: i32) -> (i32, i32) {
    %c0_i32 = arith.constant 0 : i32
    %c0_i32_0 = arith.constant 0 : i32
    %c0_i32_1 = arith.constant 0 : i32
    return %c0_i32, %c0_i32_0 : i32, i32
  }
  func.func @transform_5(%arg0: i32) -> (i32, i32) {
    %c0_i32 = arith.constant 0 : i32
    %c0_i32_0 = arith.constant 0 : i32
    %c0_i32_1 = arith.constant 0 : i32
    return %c0_i32, %c0_i32_0 : i32, i32
  }
  func.func @transform_6(%arg0: i32) -> (i32, i32) {
    %c0_i32 = arith.constant 0 : i32
    %c0_i32_0 = arith.constant 0 : i32
    %c0_i32_1 = arith.constant 0 : i32
    return %c0_i32, %c0_i32_0 : i32, i32
  }
  func.func @transform_7(%arg0: i32) -> (i32, i32) {
    %c0_i32 = arith.constant 0 : i32
    %c0_i32_0 = arith.constant 0 : i32
    %c0_i32_1 = arith.constant 0 : i32
    return %c0_i32, %c0_i32_0 : i32, i32
  }
  func.func @transform_8(%arg0: i32) -> (i32, i32) {
    %c0_i32 = arith.constant 0 : i32
    %c0_i32_0 = arith.constant 0 : i32
    %c0_i32_1 = arith.constant 0 : i32
    return %c0_i32, %c0_i32_0 : i32, i32
  }
  func.func @transform_9(%arg0: i32) -> (i32, i32) {
    %c0_i32 = arith.constant 0 : i32
    %c0_i32_0 = arith.constant 0 : i32
    %c0_i32_1 = arith.constant 0 : i32
    return %c0_i32, %c0_i32_0 : i32, i32
  }
  func.func @transform_10(%arg0: i32) -> (i32, i32) {
    %c0_i32 = arith.constant 0 : i32
    %c0_i32_0 = arith.constant 0 : i32
    %c0_i32_1 = arith.constant 0 : i32
    return %c0_i32, %c0_i32_0 : i32, i32
  }
  func.func @transform_11(%arg0: i32) -> (i32, i32) {
    %c0_i32 = arith.constant 0 : i32
    %c0_i32_0 = arith.constant 0 : i32
    %c0_i32_1 = arith.constant 0 : i32
    return %c0_i32, %c0_i32_0 : i32, i32
  }
  func.func @transform_12(%arg0: i32) -> (i32, i32) {
    %c0_i32 = arith.constant 0 : i32
    %c0_i32_0 = arith.constant 0 : i32
    %c0_i32_1 = arith.constant 0 : i32
    return %c0_i32, %c0_i32_0 : i32, i32
  }
  func.func @transform_13(%arg0: i32) -> (i32, i32) {
    %c0_i32 = arith.constant 0 : i32
    %c0_i32_0 = arith.constant 0 : i32
    %c0_i32_1 = arith.constant 0 : i32
    return %c0_i32, %c0_i32_0 : i32, i32
  }
  func.func @transform_14(%arg0: i32) -> (i32, i32) {
    %c0_i32 = arith.constant 0 : i32
    %c0_i32_0 = arith.constant 0 : i32
    %c0_i32_1 = arith.constant 0 : i32
    return %c0_i32, %c0_i32_0 : i32, i32
  }
  func.func @transform_15(%arg0: i32) -> (i32, i32) {
    %c0_i32 = arith.constant 0 : i32
    %c0_i32_0 = arith.constant 0 : i32
    %c0_i32_1 = arith.constant 0 : i32
    return %c0_i32, %c0_i32_0 : i32, i32
  }
  func.func @transform_16(%arg0: i32) -> (i32, i32) {
    %c0_i32 = arith.constant 0 : i32
    %c0_i32_0 = arith.constant 0 : i32
    %c0_i32_1 = arith.constant 0 : i32
    return %c0_i32, %c0_i32_0 : i32, i32
  }
  func.func @transform_17(%arg0: i32) -> (i32, i32) {
    %c0_i32 = arith.constant 0 : i32
    %c0_i32_0 = arith.constant 0 : i32
    %c0_i32_1 = arith.constant 0 : i32
    return %c0_i32, %c0_i32_0 : i32, i32
  }
  func.func @transform_18(%arg0: i32) -> (i32, i32, i32) {
    %c0_i32 = arith.constant 0 : i32
    %c0_i32_0 = arith.constant 0 : i32
    %c0_i32_1 = arith.constant 0 : i32
    return %arg0, %c0_i32, %c0_i32_0 : i32, i32, i32
  }
}

</mosaic_0001>

<bundles_post_ra>
// kernel: tpu_custom_call.1
= control target key start
LH: loop header
LB: loop body
LE: loop exit
PB: predicated region body
PF: predicated region fallthrough
CT: control target
= control target key end

     0   :  { %s1986_s0 = inlined_call_operand.hbm [shape: f32[2,8,32], index: 0, kind: input, shape index: {}]   ;;  %s1987_s1 = inlined_call_operand.hbm [shape: f32[2,8,8], index: 1, kind: input, shape index: {}]   ;;  %s1988_s2 = inlined_call_operand.vmem [shape: f32[32,32], index: 2, kind: input, shape index: {}]   ;;  %s1989_s3 = inlined_call_operand.vmem [shape: f32[1,32], index: 3, kind: input, shape index: {}]   ;;  %s1990_s4 = inlined_call_operand.vmem [shape: f32[32,32], index: 4, kind: input, shape index: {}]   ;;  %s1991_s5 = inlined_call_operand.vmem [shape: f32[1,32], index: 5, kind: input, shape index: {}]   ;;  %s1992_s6 = inlined_call_operand.vmem [shape: f32[32,32], index: 6, kind: input, shape index: {}]   ;;  %s1993_s7 = inlined_call_operand.vmem [shape: f32[1,32], index: 7, kind: input, shape index: {}]   ;;  %s1994_s8 = inlined_call_operand.hbm [shape: f32[32,32], index: 8, kind: input, shape index: {}]   ;;  %s1995_s9 = inlined_call_operand.vmem [shape: f32[1,32], index: 9, kind: input, shape index: {}]   ;;  %s1996_s10 = inlined_call_operand.vmem [shape: f32[1,32], index: 10, kind: input, shape index: {}]   ;;  %s1997_s11 = inlined_call_operand.vmem [shape: f32[1,32], index: 11, kind: input, shape index: {}]   ;;  %s1998_s12 = inlined_call_operand.hbm [shape: f32[32,64], index: 12, kind: input, shape index: {}]   ;;  %s1999_s13 = inlined_call_operand.vmem [shape: f32[1,64], index: 13, kind: input, shape index: {}]   ;;  %s2000_s14 = inlined_call_operand.vmem [shape: f32[64,32], index: 14, kind: input, shape index: {}]   ;;  %s2001_s15 = inlined_call_operand.vmem [shape: f32[1,32], index: 15, kind: input, shape index: {}]   ;;  %s2002_s16 = inlined_call_operand.vmem [shape: f32[1,32], index: 16, kind: input, shape index: {}]   ;;  %s2003_s17 = inlined_call_operand.vmem [shape: f32[1,32], index: 17, kind: input, shape index: {}]   ;;  %s2004_s18 = inlined_call_operand.hbm [shape: f32[2,8,32], index: 18, kind: output, shape index: {}]  }
   0x1   :  { %2018 = sst [smem:[#allocation23_spill]] %s1986_s0 }
   0x2   :  { %2019 = sst [smem:[#allocation24_spill]] %s1987_s1 }
   0x3   :  { %2020 = sst [smem:[#allocation25_spill]] %s1988_s2 }
   0x4   :  { %2021 = sst [smem:[#allocation26_spill]] %s1994_s8 }
   0x5   :  { %2022 = sst [smem:[#allocation27_spill]] %s1997_s11 }
   0x6   :  { %2023 = sst [smem:[#allocation28_spill]] %s1998_s12 }
   0x7   :  { %2024 = sst [smem:[#allocation29_spill]] %s1999_s13 }
   0x8   :  { %2025 = sst [smem:[#allocation30_spill]] %s2000_s14 }
   0x9   :  { %2026 = sst [smem:[#allocation31_spill]] %s2001_s15 }
   0xa   :  { %2027 = sst [smem:[#allocation32_spill]] %s2002_s16 }
   0xb   :  { %2028 = sst [smem:[#allocation33_spill]] %s2003_s17 }
   0xc   :  { %2029 = sst [smem:[#allocation34_spill]] %s2004_s18 }
   0xd   :  { %23 = vsyncpa [#allocation3], 0 }
   0xe   :  { %25 = vsyncpa [#allocation3 + $0x1], 0 }
   0xf   :  { %26 = vsyncpa [#allocation6], 0 }
  0x10   :  { %28 = vsyncpa [#allocation6 + $0x1], 0 }
  0x11   :  { %29 = vsyncpa [#allocation9], 0 }
  0x12   :  { %30 = vsyncpa [#allocation4], 0 }
  0x13   :  { %32 = vsyncpa [#allocation4 + $0x1], 0  ;;  %s1677_s27 = smov 0   ;;  %s1679_s28 = smov 0  }
  0x14   :  { %s1681_s29 = smov 0   ;;  %s1683_s30 = smov 0  }
  0x15 LB: > { %2030 = sst [smem:[#allocation16_spill]] %s1561_s27  ;;  %s1701_s20 = sadd.s32 4294967295, %s1573_s30   ;;  %s1573_s30 = sphi %s1683_s30, %s2060_s30   ;;  %s1569_s29 = sphi %s1681_s29, %s2062_s29   ;;  %s1565_s28 = sphi %s1679_s28, %s2064_s28   ;;  %s1561_s27 = sphi %s1677_s27, %s2063_s27  }
  0x16   : > { %2031 = sst [smem:[#allocation17_spill]] %s1569_s29  ;;  %p1239_p0 = scmp.ge.s32.totalorder %s1573_s30, 1 }
  0x17   : > { %2032 = sst [smem:[#allocation18_spill]] %s1573_s30  ;;  %p59_p1 = scmp.eq.s32.totalorder %s1701_s20, 0 }
  0x18   : > { %s2033_s8 = sld [smem:[#allocation26_spill]]  ;;  %p457_p2 = scmp.lt.s32.totalorder %s1573_s30, 3 }
  0x19   : > { %s1575_s22 = smov [#allocation7]   ;;  %s2035_s12 = sld [smem:[#allocation28_spill]] }
  0x1a   : > { %p1706_p3 = pnand %p1239_p0, %p457_p2  ;;  %s488_s2 = sshll.u32 %s1575_s22, 4  ;;  %s489_s2 = int_to_ptr.vmem [resolvable:$true] %s488_s2 }
  0x1b   : > { %s1576_s26 = smov [#allocation8]   ;;  %s1577_s19 = smov 128  }
  0x1c   : > { %p1284_p4 = pneg %p1706_p3  ;;  %s511_s0 = sshll.u32 %s1576_s26, 4  ;;  %s512_s0 = int_to_ptr.vmem [resolvable:$true] %s511_s0 }
  0x1d   : > { %s1578_s22 = smov 8   ;;  %s1238_s23 = sadd.s32 4294967294, %s1573_s30  }
  0x1e   : > { %s486_s1 = sshll.u32 %s2033_s8, 4  ;;  %p1285_p6 = pnand %p1284_p4, %p59_p1  ;;  %s487_s1 = int_to_ptr.hbm [resolvable:$true] %s486_s1 }
  0x1f   : > { %s509_s25 = sshll.u32 %s2035_s12, 4  ;;  %s1720_s24 = sadd.s32 1, %s1573_s30   ;;  %s510_s25 = int_to_ptr.hbm [resolvable:$true] %s509_s25 }
  0x20   : > { %1287 = dma.hbm_to_vmem [thread:$0]  (!%p1285_p6), %s487_s1, 512, %s489_s2, [#allocation6], %s1577_s19, %s1577_s19, %s1578_s22  }
  0x21   : > { %1290 = dma.hbm_to_vmem [thread:$0]  (!%p1285_p6), %s510_s25, 512, %s512_s0, [#allocation9], %s1577_s19, %s1577_s19, %s1578_s22  }
  0x22   : > { %2036 = sst [smem:[#allocation19_spill]] %s1720_s24  ;;  %s42_s8 = ssub.s32 %s1573_s30, %s1720_s24 }
  0x23   : > { %s45_s12 = sadd.s32 1, %s1569_s29  ;;  %p43_p7 = scmp.eq.s32.totalorder %s42_s8, 0 }
  0x24   : > { %p52_p8 = scmp.ne.s32.totalorder %s1569_s29, %s1565_s28  ;;  %p53_p9 = scmp.eq.s32.totalorder %s1573_s30, 0 }
  0x25   : > { %p58_p10 = scmp.ne.s32.totalorder %s1565_s28, %s1561_s27  ;;  %p444_p13 = scmp.eq.s32.totalorder %s1701_s20, 1 }
  0x26   : > { %s1731_s26 = scalar_select %p43_p7, %s1569_s29, %s45_s12  }
  0x27   : > { %p1733_p11 = por %p53_p9, %p52_p8  ;;  %p1739_p12 = por %p59_p1, %p58_p10 }
  0x28   : > { %2037 = sst [smem:[#allocation20_spill]] %s1731_s26  ;;  %p450_p0 = scmp.eq.s32.totalorder %s1238_s23, 1 }
  0x29   : > { %p1304_p2 = scmp.lt.s32.totalorder %s1573_s30, 2  ;;  %s540_s8 = sand.u32 1, %s1569_s29  }
  0x2a   : > { %p1746_p4 = por %p444_p13, %p52_p8  ;;  %p1750_p6 = por %p450_p0, %p58_p10 }
  0x2b   : > { %s1754_s25 = sshll.u32 %s540_s8, 3  ;;  %s1244_s0 = sshll.u32 %s1573_s30, 3 }
  0x2c   : > { %s2040_s2 = scalar_select %p1746_p4, 1, 0 }
  0x2d   : > { %s2042_s12 = scalar_select %p1750_p6, 1, 0 }
  0x2e   : > { %2041 = sst [smem:[#allocation21_spill]] %s2040_s2  ;;  %s544_s27 = scalar_lea.vmem [#allocation2], %s1754_s25 }
  0x2f   : > { %2043 = sst [smem:[#allocation22_spill]] %s2042_s12  ;;  %s552_s23 = sshll.u32 %s544_s27, 4  ;;  %s553_s23 = int_to_ptr.vmem [resolvable:$true] %s552_s23 }
  0x30   : > { %s2044_s26 = sld [smem:[#allocation23_spill]]  ;;  %p1763_p7 = pnand %p1304_p2, %p1733_p11 }
  0x31   : > { %s2046_s16 = sld [smem:[#allocation24_spill]]  ;;  %s559_s13 = sand.u32 1, %s1573_s30  }
  0x32   : > { %s541_s14 = scalar_lea.sflag [#allocation3], %s540_s8  ;;  %p1439_p9 = pneg %p1763_p7 }
  0x36   : > { %s548_s24 = scalar_lea.hbm %s2044_s26, %s1244_s0 }
  0x37   : > { %s550_s18 = sshll.u32 %s548_s24, 4  ;;  %s567_s15 = scalar_lea.hbm %s2046_s16, %s1244_s0  ;;  %s551_s18 = int_to_ptr.hbm [resolvable:$true] %s550_s18 }
  0x38   : > { %s1435_s19 = sshra.s32 %s551_s18, 4  ;;  %s1442_s24 = scalar_lea.hbm %s2044_s26, 16  ;;  %s1436_s19 = int_to_ptr.hbm [resolvable:$true] %s1435_s19 }
  0x39   : > { %s1437_s22 = scalar_lea.hbm %s1436_s19, 8  ;;  %p1443_p13 = scmp.lt.s32.totalorder %s1436_s19, %s2044_s26 }
  0x3a   : > { %p1438_p8 = scmp.ne.s32.totalorder %s1436_s19, %s1437_s22  ;;  %p1444_p0 = scmp.lt.s32.totalorder %s1442_s24, %s1437_s22 }
  0x3c   : > { %p1440_p10 = pnand %p1439_p9, %p1438_p8  ;;  %p1445_p2 = por %p1444_p0, %p1443_p13 }
  0x3e   : > { %p1441_p11 = pneg %p1440_p10 }
  0x40   : > { %p1446_p5 = pnand %p1445_p2, %p1441_p11 }
  0x42   : > { %1449 = shalt.err (!%p1446_p5)
}
  0x43   : > { %1294 = dma.hbm_to_vmem [thread:$0]  (!%p1763_p7), %s551_s18, 128, %s553_s23, %s541_s14  }
  0x44   : > { %s569_s8 = sshll.u32 %s567_s15, 4  ;;  %s563_s0 = scalar_lea.vmem [#allocation5], %s1754_s25  ;;  %s570_s8 = int_to_ptr.hbm [resolvable:$true] %s569_s8 }
  0x45   : > { %s571_s30 = sshll.u32 %s563_s0, 4  ;;  %s560_s17 = scalar_lea.sflag [#allocation6], %s559_s13  ;;  %s572_s30 = int_to_ptr.vmem [resolvable:$true] %s571_s30 }
  0x46   : > { %s1465_s27 = sshra.s32 %s570_s8, 4  ;;  %s1472_s24 = scalar_lea.hbm %s2046_s16, 16  ;;  %s1466_s27 = int_to_ptr.hbm [resolvable:$true] %s1465_s27 }
  0x47   : > { %s1467_s11 = scalar_lea.hbm %s1466_s27, 8  ;;  %p1473_p5 = scmp.lt.s32.totalorder %s1466_s27, %s2046_s16 }
  0x48   : > { %p1468_p8 = scmp.ne.s32.totalorder %s1466_s27, %s1467_s11  ;;  %p1474_p13 = scmp.lt.s32.totalorder %s1472_s24, %s1467_s11 }
  0x4a   : > { %p1470_p10 = pnand %p1468_p8, %p1439_p9  ;;  %p1475_p0 = por %p1474_p13, %p1473_p5 }
  0x4c   : > { %p1471_p11 = pneg %p1470_p10 }
  0x4e   : > { %p1476_p2 = pnand %p1475_p0, %p1471_p11 }
  0x50   : > { %1479 = shalt.err (!%p1476_p2)
}
  0x51   : > { %1297 = dma.hbm_to_vmem [thread:$0]  (!%p1763_p7), %s570_s8, 128, %s572_s30, %s560_s17  }
  0x52   : > { %580 = sbr.rel (%p1706_p3) target bundleno = 1973 (0x7b5), region = 92  ;;  %s1799_s13 = sand.u32 (!%p1706_p3), 1, %s1565_s28  }
  0x53   : > { %s1802_s15 = sshll.u32 (!%p1706_p3), %s1799_s13, 3  ;;  %s583_s18 = scalar_lea.sflag (!%p1706_p3), [#allocation3], %s1799_s13 }
  0x54   : > { %s586_s11 = scalar_lea.vmem (!%p1706_p3), [#allocation2], %s1802_s15 }
  0x57   : > { %1540 = dma.done.wait (%p1739_p12), %s583_s18, 128  }
  0x58   : > { %1542 = vsyncadd (%p1739_p12), %s583_s18, 4294967168  ;;  %s592_s29 = sand.u32 1, %s1701_s20   ;;  %s596_s21 = scalar_lea.vmem [#allocation5], %s1802_s15 }
  0x59   : > { %s593_s30 = scalar_lea.sflag [#allocation6], %s592_s29 }
  0x5a   : > { %1544 = dma.done.wait (%p1739_p12), %s593_s30, 128  }
  0x5b   : > { %1546 = vsyncadd (%p1739_p12), %s593_s30, 4294967168 }
  0x5c   : > { %1548 = dma.done.wait (%p59_p1), [#allocation6], 512  }
  0x5d   : > { %1550 = vsyncadd (%p59_p1), [#allocation6], 4294966784 }
  0x5e   : > { %1552 = dma.done.wait (%p59_p1), [#allocation9], 512  }
  0x5f   : > { %1554 = vsyncadd (%p59_p1), [#allocation9], 4294966784  ;;  %s2047_s12 = sld [smem:[#allocation25_spill]]  ;;  %v1836_v4 = vld [vmem:[%s586_s11] sm:$0xff]  ;;  %vm674_vm0 = vcmask 261120   ;;  %v701_v5 = vld [vmem:[%s1990_s4 + $0x18] sm:$0xff] }
  0x60   : > { %v700_v6 = vld [vmem:[%s1990_s4 + $0x10] sm:$0xff]  ;;  %v699_v7 = vld [vmem:[%s1990_s4 + $0x8] sm:$0xff]  ;;  %v698_v8 = vld [vmem:[%s1990_s4] sm:$0xff]  ;;  %vm755_vm1 = vcmask 130048   ;;  %s1579_s1 = smov 112   ;;  %vm784_vm2 = vcmask 64512  }
  0x61   : > { %v1348_v10 = vld [vmem:[%s1991_s5] ss:$0 sm:$0xff]  ;;  %v729_v17 = vld [vmem:[%s1992_s6 + $0x18] sm:$0xff]  ;;  %v728_v18 = vld [vmem:[%s1992_s6 + $0x10] sm:$0xff]  ;;  %s2048_s17 = sld [smem:[#allocation27_spill]]  ;;  %s1267_s29 = sshll.u32 %s1701_s20, 3 }
  0x62   : > { %v1347_v11 = vld [vmem:[%s1989_s3] ss:$0 sm:$0xff]  ;;  %746 = vmatpush.msra.mxu2 %v729_v17  ;;  %v727_v19 = vld [vmem:[%s1992_s6 + $0x8] sm:$0xff]  ;;  %v754_v24 = vld [vmem:[%s596_s21] sm:$0xff]  ;;  %s1580_s21 = smov 16   ;;  %s2049_s22 = sld [smem:[#allocation30_spill]] }
  0x63   : > { %v726_v20 = vld [vmem:[%s1992_s6] sm:$0xff]  ;;  %s2051_s18 = sld [smem:[#allocation31_spill]]  ;;  %s664_s20 = scalar_lea.vmem [#allocation10], %s1802_s15 }
  0x64   : > { %747 = vmatpush.msra.mxu2 %v728_v18  ;;  %v1349_v30 = vld [vmem:[%s1993_s7] ss:$0 sm:$0xff]  ;;  %v1581_v18 = vmov 32.0   ;;  %s2052_s30 = sld [smem:[#allocation32_spill]]  ;;  %s1123_s24 = sshll.u32 %s664_s20, 4  ;;  %s1124_s24 = int_to_ptr.vmem [resolvable:$true] %s1123_s24 }
  0x65   : > { %v669_v0 = vld [vmem:[%s2047_s12 + $0x18] sm:$0xff]  ;;  %v668_v1 = vld [vmem:[%s2047_s12 + $0x10] sm:$0xff]  ;;  %v667_v2 = vld [vmem:[%s2047_s12 + $0x8] sm:$0xff]  ;;  %s2053_s8 = sld [smem:[#allocation34_spill]]  ;;  %s1111_s14 = scalar_lea.sflag [#allocation4], %s1799_s13 }
  0x66   : > { %690 = vmatpush.msra.mxu1 %v669_v0  ;;  %v666_v3 = vld [vmem:[%s2047_s12] sm:$0xff]  ;;  %748 = vmatpush.msra.mxu2 %v727_v19  ;;  %s2055_s19 = sld [smem:[#allocation33_spill]] }
  0x68   : > { %691 = vmatpush.msra.mxu1 %v668_v1  ;;  %749 = vmatpush.msra.mxu2 %v726_v20 }
  0x69   : > { %1255 = vmatmul.msk.f32.vlgmr.msra.gmra.mxu2 %vm674_vm0, %v1836_v4 }
  0x6a   : > { %692 = vmatpush.msra.mxu1 %v667_v2 }
  0x6b   : > { %s1121_s0 = scalar_lea.hbm %s2053_s8, %s1267_s29  ;;  %s1515_s15 = scalar_lea.hbm %s2053_s8, 16 }
  0x6c   : > { %693 = vmatpush.msra.mxu1 %v666_v3  ;;  %s1125_s2 = sshll.u32 %s1121_s0, 4  ;;  %s1126_s2 = int_to_ptr.hbm [resolvable:$true] %s1125_s2 }
  0x6d   : > { %1253 = vmatmul.msk.f32.vlgmr.msra.gmra.mxu1 %vm674_vm0, %v1836_v4 }
  0x6e   : > { %718 = vmatpush.msrb.mxu1 %v701_v5  ;;  %v921_v5 = vld [vmem:[#allocation7 + $0x18] sm:$0xff] }
  0x6f   : > { %941 = vmatpush.msrb.mxu2 %v921_v5 }
  0x70   : > { %719 = vmatpush.msrb.mxu1 %v700_v6  ;;  %v920_v6 = vld [vmem:[#allocation7 + $0x10] sm:$0xff] }
  0x71   : > { %942 = vmatpush.msrb.mxu2 %v920_v6 }
  0x72   : > { %720 = vmatpush.msrb.mxu1 %v699_v7  ;;  %v919_v7 = vld [vmem:[#allocation7 + $0x8] sm:$0xff] }
  0x73   : > { %943 = vmatpush.msrb.mxu2 %v919_v7 }
  0x74   : > { %721 = vmatpush.msrb.mxu1 %v698_v8  ;;  %v918_v8 = vld [vmem:[#allocation7] sm:$0xff] }
  0x75   : > { %1254 = vmatmul.msk.f32.vlgmr.msrb.gmra.mxu1 %vm674_vm0, %v1836_v4  ;;  %944 = vmatpush.msrb.mxu2 %v918_v8 }
  0xea   : > { %v695_v9 = vpop.f32.mrf.mxu1 }
  0xeb   : > { %v696_v14 = vadd.f32 %v1347_v11, %v695_v9 }
  0xec   : > { %v751_v32 = vpop.f32.mrf.mxu2 }
  0xed   : > { %v752_v34 = vadd.f32 %v1349_v30, %v751_v32  ;;  %v991_v30 = vld [vmem:[#allocation8 + $0x10] sm:$0xff]  ;;  %v989_v32 = vld [vmem:[#allocation8] sm:$0xff] }
  0xf2   : > { %v723_v12 = vpop.f32.mrf.mxu1 }
  0xf3   : > { %v724_v13 = vadd.f32 %v1348_v10, %v723_v12 }
  0xf5   : > { %834 = vrot.lane.b32.xlu0 %v724_v13, %s1579_s1  ;;  %1256 = vmatpush.xpose.msk.msra.mxu3 %vm755_vm1, %v724_v13  ;;  %v1350_v13 = vld [vmem:[%s1995_s9] ss:$0 sm:$0xff] }
  0xf8   : > { %1257 = vmatmul.msk.f32.vlgmr.msra.gmra.mxu3 %vm755_vm1, %v696_v14 }
  0xf9   : > { %827 = vmatpush.msrb.mxu3 %v752_v34 }
  0xfd   : > { %832 = vrot.lane.b32.xlu0 %v696_v14, %s1579_s1 }
 0x167   : > { %v835_v15 = vpop.permute.xlu0 %834 }
 0x168   : > { %1259 = vmatpush.xpose.msk.msra.mxu0 %vm755_vm1, %v835_v15 }
 0x16f   : > { %v833_v16 = vpop.permute.xlu0 %832 }
 0x170   : > { %1260 = vmatmul.msk.f32.vlgmr.msra.gmra.mxu0 %vm755_vm1, %v833_v16 }
 0x17b   : > { %v779_v23 = vpop.f32.mrf.mxu3 }
 0x17c   : > { %v782_v26 = vmul.f32 0.25, %v779_v23 }
 0x17e   : > { %v783_v28 = vadd.f32 %v782_v26, %v754_v24 }
 0x180   : > { %v785_v29 = vsel %vm784_vm2, %v783_v28, -inf }
 0x1ed   : > { %v857_v21 = vpop.f32.mrf.mxu0 }
 0x1ee   : > { %v860_v22 = vmul.f32 0.25, %v857_v21 }
 0x1f0   : > { %v861_v25 = vadd.f32 %v860_v22, %v754_v24 }
 0x1f2   : > { %v862_v27 = vsel %vm784_vm2, %v861_v25, -inf }
 0x1f3   : > { %863 = vmax.xlane.f32.xlu1 %v862_v27 }
 0x1fb   : > { %786 = vmax.xlane.f32.xlu1 %v785_v29  ;;  %v992_v29 = vld [vmem:[#allocation8 + $0x18] sm:$0xff] }
 0x1fc   : > { %1012 = vmatpush.msra.mxu3 %v992_v29  ;;  %v1355_v29 = vld [vmem:[%s2052_s30] ss:$0 sm:$0xff] }
 0x1fe   : > { %1013 = vmatpush.msra.mxu3 %v991_v30 }
 0x266   : > { %v864_v31 = vpop.xlane.xlu1 %863 }
 0x267   : > { %v865_v33 = vsub.f32 %v861_v25, %v864_v31  ;;  %v990_v31 = vld [vmem:[#allocation8 + $0x8] sm:$0xff] }
 0x268   : > { %1014 = vmatpush.msra.mxu3 %v990_v31  ;;  %v1356_v31 = vld [vmem:[%s2055_s19] ss:$0 sm:$0xff] }
 0x269   : > { %v866_v35 = vmul.f32 1.442695, %v865_v33 }
 0x26a   : > { %1015 = vmatpush.msra.mxu3 %v989_v32 }
 0x26b   : > { %1357 = vpow2.f32 %v866_v35 }
 0x26e   : > { %v787_v36 = vpop.xlane.xlu1 %786 }
 0x26f   : > { %v788_v37 = vsub.f32 %v783_v28, %v787_v36 }
 0x271   : > { %v1358_v38 = vpop.eup %1357  ;;  %v789_v39 = vmul.f32 1.442695, %v788_v37 }
 0x272   : > { %v868_v40 = vsel %vm784_vm2, %v1358_v38, 0.0 }
 0x273   : > { %1359 = vpow2.f32 %v789_v39  ;;  %869 = vadd.xlane.f32.xlu2 %v868_v40 }
 0x279   : > { %v1360_v41 = vpop.eup %1359 }
 0x27a   : > { %v791_v42 = vsel %vm784_vm2, %v1360_v41, 0.0 }
 0x27b   : > { %792 = vadd.xlane.f32.xlu0 %v791_v42  ;;  %v1351_v42 = vld [vmem:[%s1996_s10] ss:$0 sm:$0xff] }
 0x28b   : > { %887 = vrot.lane.b32.xlu2 %v752_v34, %s1579_s1  ;;  %s2050_s1 = sld [smem:[#allocation29_spill]] }
 0x2e6   : > { %v870_v43 = vpop.xlane.xlu2 %869 }
 0x2e7   : > { %1361 = vrcp.f32 %v870_v43  ;;  %v882_v49 = vand.u32 2147483648, %v870_v43  ;;  %v880_v51 = vand.u32 2147483647, %v870_v43  ;;  %vm876_vm4 = vweird.f32 %v870_v43 }
 0x2e9   : > { %v883_v54 = vor.u32 1.1754944e-38, %v882_v49  ;;  %vm881_vm6 = vcmp.eq.f32.partialorder %v880_v51, 8.507059e+37  ;;  %v1046_v49 = vld [vmem:[%s2049_s22 + $0x30] sm:$0xff]  ;;  %v1044_v51 = vld [vmem:[%s2049_s22 + $0x20] sm:$0xff] }
 0x2ed   : > { %v1362_v44 = vpop.eup %1361 }
 0x2ee   : > { %v872_v45 = vmul.f32 %v1362_v44, %v870_v43  ;;  %v793_v46 = vpop.xlane.xlu0 %792  ;;  %v888_v47 = vpop.permute.xlu2 %887  ;;  %vm877_vm3 = vweird.f32 %v1362_v44 }
 0x2ef   : > { %1363 = vrcp.f32 %v793_v46  ;;  %908 = vmatpush.msra.mxu1 %v888_v47  ;;  %vm878_vm5 = vmor %vm876_vm4, %vm877_vm3  ;;  %v805_v60 = vand.u32 2147483648, %v793_v46  ;;  %v803_v62 = vand.u32 2147483647, %v793_v46  ;;  %vm799_vm8 = vweird.f32 %v793_v46 }
 0x2f0   : > { %v873_v48 = vsub.f32 1.0, %v872_v45  ;;  %1365 = vrcp.f32 %v1581_v18  ;;  %v1352_v45 = vld [vmem:[%s2048_s17] ss:$0 sm:$0xff]  ;;  %vm1052_vm4 = vcmask 523264  }
 0x2f1   : > { %v806_v0 = vor.u32 1.1754944e-38, %v805_v60  ;;  %vm804_vm10 = vcmp.eq.f32.partialorder %v803_v62, 8.507059e+37 }
 0x2f2   : > { %v874_v50 = vmul.f32 %v1362_v44, %v873_v48  ;;  %v1047_v48 = vld [vmem:[%s2049_s22 + $0x38] sm:$0xff] }
 0x2f3   : > { %1064 = vmatpush.msrb.mxu0 %v1047_v48 }
 0x2f4   : > { %v875_v52 = vadd.f32 %v1362_v44, %v874_v50  ;;  %v1045_v50 = vld [vmem:[%s2049_s22 + $0x28] sm:$0xff] }
 0x2f5   : > { %v1364_v53 = vpop.eup %1363  ;;  %1065 = vmatpush.msrb.mxu0 %v1046_v49 }
 0x2f6   : > { %v879_v55 = vsel %vm878_vm5, %v1362_v44, %v875_v52  ;;  %v795_v56 = vmul.f32 %v1364_v53, %v793_v46  ;;  %vm800_vm7 = vweird.f32 %v1364_v53  ;;  %v1366_v19 = vpop.eup %1365  ;;  %v1043_v52 = vld [vmem:[%s2049_s22 + $0x18] sm:$0xff] }
 0x2f7   : > { %v884_v57 = vsel %vm881_vm6, %v883_v54, %v879_v55  ;;  %vm801_vm9 = vmor %vm799_vm8, %vm800_vm7  ;;  %v956_v20 = vmul.f32 32.0, %v1366_v19  ;;  %vm960_vm11 = vweird.f32 %v1366_v19  ;;  %1066 = vmatpush.msrb.mxu0 %v1045_v50  ;;  %v1353_v54 = vld [vmem:[%s2050_s1] ss:$0 sm:$0xff]  ;;  %v1041_v55 = vld [vmem:[%s2049_s22 + $0x8] sm:$0xff] }
 0x2f8   : > { %v796_v58 = vsub.f32 1.0, %v795_v56  ;;  %v885_v59 = vmul.f32 %v1358_v38, %v884_v57  ;;  %v1040_v56 = vld [vmem:[%s2049_s22] sm:$0xff] }
 0x2f9   : > { %v957_v21 = vsub.f32 1.0, %v956_v20  ;;  %1067 = vmatpush.msrb.mxu0 %v1044_v51 }
 0x2fa   : > { %v797_v61 = vmul.f32 %v1364_v53, %v796_v58  ;;  %1261 = vmatmul.msk.f32.vlgmr.msra.gmra.mxu1 %vm784_vm2, %v885_v59 }
 0x2fb   : > { %v958_v22 = vmul.f32 %v1366_v19, %v957_v21  ;;  %1068 = vmatpush.msrb.mxu0 %v1043_v52 }
 0x2fc   : > { %v798_v63 = vadd.f32 %v1364_v53, %v797_v61 }
 0x2fd   : > { %v959_v23 = vadd.f32 %v1366_v19, %v958_v22 }
 0x2fe   : > { %v802_v1 = vsel %vm801_vm9, %v1364_v53, %v798_v63  ;;  %v1042_v53 = vld [vmem:[%s2049_s22 + $0x10] sm:$0xff] }
 0x2ff   : > { %v807_v2 = vsel %vm804_vm10, %v806_v0, %v802_v1  ;;  %v1899_v24 = vsel %vm960_vm11, %v1366_v19, %v959_v23  ;;  %1069 = vmatpush.msrb.mxu0 %v1042_v53 }
 0x300   : > { %v808_v3 = vmul.f32 %v1360_v41, %v807_v2 }
 0x301   : > { %1070 = vmatpush.msrb.mxu0 %v1041_v55 }
 0x302   : > { %1258 = vmatmul.msk.f32.vlgmr.msrb.gmra.mxu3 %vm784_vm2, %v808_v3 }
 0x303   : > { %1071 = vmatpush.msrb.mxu0 %v1040_v56 }
 0x377   : > { %v910_v9 = vpop.f32.mrf.mxu1 }
 0x378   : > { %914 = vrot.lane.b32.xlu1 %v910_v9, %s1580_s21 }
 0x385   : > { %v829_v10 = vpop.f32.mrf.mxu3 }
 0x3ea   : > { %v915_v11 = vpop.permute.xlu1 %914 }
 0x3eb   : > { %v917_v12 = vsel %vm755_vm1, %v829_v10, %v915_v11  ;;  %v1354_v10 = vld [vmem:[%s2051_s18] ss:$0 sm:$0xff]  ;;  %s1509_s18 = sshra.s32 %s1126_s2, 4  ;;  %s1510_s18 = int_to_ptr.hbm [resolvable:$true] %s1509_s18 }
 0x3ec   : > { %1262 = vmatmul.msk.f32.vlgmr.msrb.gmra.mxu2 %vm674_vm0, %v917_v12  ;;  %s1511_s29 = scalar_lea.hbm %s1510_s18, 8  ;;  %p1516_p7 = scmp.lt.s32.totalorder %s1510_s18, %s2053_s8 }
 0x3ed   : > { %p1512_p1 = scmp.ne.s32.totalorder %s1510_s18, %s1511_s29  ;;  %p1517_p9 = scmp.lt.s32.totalorder %s1515_s15, %s1511_s29 }
 0x3ef   : > { %p1513_p3 = pnand %p1512_p1, %p1746_p4  ;;  %p1518_p8 = por %p1517_p9, %p1516_p7 }
 0x3f1   : > { %p1514_p12 = pneg %p1513_p3 }
 0x3f3   : > { %p1519_p10 = pnand %p1518_p8, %p1514_p12 }
 0x46f   : > { %v946_v14 = vpop.f32.mrf.mxu2 }
 0x470   : > { %v947_v15 = vadd.f32 %v1350_v13, %v946_v14 }
 0x472   : > { %v949_v16 = vadd.f32 %v947_v15, %v1836_v4 }
 0x474   : > { %v952_v17 = vsel %vm674_vm0, %v949_v16, 0.0 }
 0x475   : > { %953 = vadd.xlane.f32.xlu2 %v952_v17 }
 0x4e8   : > { %v954_v25 = vpop.xlane.xlu2 %953 }
 0x4e9   : > { %v962_v26 = vmul.f32 %v1899_v24, %v954_v25 }
 0x4eb   : > { %v963_v27 = vsub.f32 %v949_v16, %v962_v26 }
 0x4ed   : > { %v964_v28 = vmul.f32 %v963_v27, %v963_v27 }
 0x4ef   : > { %v965_v4 = vsel %vm674_vm0, %v964_v28, 0.0 }
 0x4f0   : > { %966 = vadd.xlane.f32.xlu1 %v965_v4 }
 0x563   : > { %v967_v33 = vpop.xlane.xlu1 %966 }
 0x564   : > { %v968_v34 = vmul.f32 %v967_v33, %v1899_v24 }
 0x566   : > { %v969_v35 = vadd.f32 1e-12, %v968_v34 }
 0x568   : > { %1367 = vrsqrt.f32 %v969_v35  ;;  %vm976_vm13 = vweird.f32 %v969_v35 }
 0x56e   : > { %v1368_v36 = vpop.eup %1367 }
 0x56f   : > { %v971_v37 = vmul.f32 %v1368_v36, %v969_v35  ;;  %vm977_vm12 = vweird.f32 %v1368_v36 }
 0x570   : > { %vm978_vm14 = vmor %vm976_vm13, %vm977_vm12 }
 0x571   : > { %v972_v38 = vmul.f32 %v1368_v36, %v971_v37 }
 0x573   : > { %v973_v39 = vmul.f32 0.5, %v972_v38 }
 0x575   : > { %v974_v40 = vsub.f32 1.5, %v973_v39 }
 0x577   : > { %v975_v41 = vmul.f32 %v1368_v36, %v974_v40 }
 0x579   : > { %v979_v43 = vsel %vm978_vm14, %v1368_v36, %v975_v41 }
 0x57a   : > { %v980_v44 = vmul.f32 %v979_v43, %v963_v27 }
 0x57c   : > { %v984_v46 = vmul.f32 %v1351_v42, %v980_v44 }
 0x57e   : > { %v988_v47 = vadd.f32 %v1352_v45, %v984_v46 }
 0x580   : > { %1263 = vmatmul.msk.f32.vlgmr.msra.gmra.mxu3 %vm674_vm0, %v988_v47 }
 0x603   : > { %v1017_v57 = vpop.f32.mrf.mxu3 }
 0x604   : > { %v1018_v58 = vadd.f32 %v1353_v54, %v1017_v57 }
 0x606   : > { %v1264_v59 = vmul.f32 -1.442695, %v1018_v58 }
 0x608   : > { %1369 = vpow2.f32 %v1264_v59 }
 0x60e   : > { %v1370_v60 = vpop.eup %1369 }
 0x60f   : > { %v1023_v61 = vadd.f32 1.0, %v1370_v60 }
 0x611   : > { %1371 = vrcp.f32 %v1023_v61  ;;  %v1035_v1 = vand.u32 2147483648, %v1023_v61  ;;  %v1033_v3 = vand.u32 2147483647, %v1023_v61  ;;  %vm1029_vm1 = vweird.f32 %v1023_v61 }
 0x613   : > { %v1036_v6 = vor.u32 1.1754944e-38, %v1035_v1  ;;  %vm1034_vm3 = vcmp.eq.f32.partialorder %v1033_v3, 8.507059e+37 }
 0x617   : > { %v1372_v62 = vpop.eup %1371 }
 0x618   : > { %v1025_v63 = vmul.f32 %v1372_v62, %v1023_v61  ;;  %vm1030_vm15 = vweird.f32 %v1372_v62 }
 0x619   : > { %vm1031_vm2 = vmor %vm1029_vm1, %vm1030_vm15 }
 0x61a   : > { %v1026_v0 = vsub.f32 1.0, %v1025_v63 }
 0x61c   : > { %v1027_v2 = vmul.f32 %v1372_v62, %v1026_v0 }
 0x61e   : > { %v1028_v5 = vadd.f32 %v1372_v62, %v1027_v2 }
 0x620   : > { %v1032_v7 = vsel %vm1031_vm2, %v1372_v62, %v1028_v5 }
 0x621   : > { %v1037_v8 = vsel %vm1034_vm3, %v1036_v6, %v1032_v7 }
 0x622   : > { %v1039_v9 = vmul.f32 %v1037_v8, %v1018_v58 }
 0x624   : > { %1265 = vmatmul.msk.f32.vlgmr.msrb.gmra.mxu0 %vm1052_vm4, %v1039_v9 }
 0x6a1   : > { %v1073_v11 = vpop.f32.mrf.mxu0 }
 0x6a2   : > { %v1074_v12 = vadd.f32 %v1354_v10, %v1073_v11 }
 0x6a4   : > { %v1076_v13 = vadd.f32 %v1074_v12, %v988_v47 }
 0x6a6   : > { %v1079_v14 = vsel %vm674_vm0, %v1076_v13, 0.0 }
 0x6a7   : > { %1080 = vadd.xlane.f32.xlu0 %v1079_v14 }
 0x71a   : > { %v1081_v15 = vpop.xlane.xlu0 %1080 }
 0x71b   : > { %v1082_v16 = vmul.f32 %v1081_v15, %v1899_v24 }
 0x71d   : > { %v1083_v17 = vsub.f32 %v1076_v13, %v1082_v16 }
 0x71f   : > { %v1084_v18 = vmul.f32 %v1083_v17, %v1083_v17 }
 0x721   : > { %v1085_v19 = vsel %vm674_vm0, %v1084_v18, 0.0 }
 0x722   : > { %1086 = vadd.xlane.f32.xlu0 %v1085_v19 }
 0x795   : > { %v1087_v20 = vpop.xlane.xlu0 %1086 }
 0x796   : > { %v1088_v21 = vmul.f32 %v1087_v20, %v1899_v24 }
 0x798   : > { %v1089_v22 = vadd.f32 1e-12, %v1088_v21 }
 0x79a   : > { %1373 = vrsqrt.f32 %v1089_v22  ;;  %vm1096_vm6 = vweird.f32 %v1089_v22 }
 0x7a0   : > { %v1374_v23 = vpop.eup %1373 }
 0x7a1   : > { %v1091_v25 = vmul.f32 %v1374_v23, %v1089_v22  ;;  %vm1097_vm5 = vweird.f32 %v1374_v23 }
 0x7a2   : > { %vm1098_vm7 = vmor %vm1096_vm6, %vm1097_vm5 }
 0x7a3   : > { %v1092_v26 = vmul.f32 %v1374_v23, %v1091_v25 }
 0x7a5   : > { %v1093_v27 = vmul.f32 0.5, %v1092_v26 }
 0x7a7   : > { %v1094_v28 = vsub.f32 1.5, %v1093_v27 }
 0x7a9   : > { %v1095_v4 = vmul.f32 %v1374_v23, %v1094_v28 }
 0x7ab   : > { %v1099_v24 = vsel %vm1098_vm7, %v1374_v23, %v1095_v4 }
 0x7ac   : > { %v1100_v30 = vmul.f32 %v1099_v24, %v1083_v17 }
 0x7ae   : > { %v1104_v32 = vmul.f32 %v1355_v29, %v1100_v30 }
 0x7b0   : > { %v1108_v33 = vadd.f32 %v1356_v31, %v1104_v32 }
 0x7b2   : > { %1109 = vst.msk [vmem:[%s664_s20] sm:$0xff] %vm674_vm0, %v1108_v33 }
 0x7b3   : > { %1522 = shalt.err (!%p1519_p10)
}
 0x7b4   : > { %1282 = dma.vmem_to_hbm [thread:$0]  (%p1746_p4), %s1124_s24, 128, %s1126_s2, %s1111_s14  }
 0x7b5 PF: > { %s2056_s13 = sld [smem:[#allocation16_spill]] }
 0x7b6   : > { %s2058_s0 = sld [smem:[#allocation18_spill]] }
 0x7bb   : > { %s1137_s17 = sand.u32 1, %s2056_s13  }
 0x7bc   : > { %p2059_p11 = scmp.ge.s32.totalorder %s2058_s0, 2  ;;  %s1138_s27 = scalar_lea.sflag [#allocation4], %s1137_s17 }
 0x7be   : > { %p1299_p5 = pnand %p2059_p11, %p1750_p6 }
 0x7c0   : > { %p1300_p13 = pneg %p1299_p5 }
 0x7c2   : > { %1556 = dma.done.wait (%p1300_p13), %s1138_s27, 128  }
 0x7c3   : > { %1558 = vsyncadd (%p1300_p13), %s1138_s27, 4294967168  ;;  %s2060_s30 = sld [smem:[#allocation19_spill]]  ;;  %s2063_s27 = smov %s1565_s28 }
 0x7c4   : > { %s2061_s19 = sld [smem:[#allocation17_spill]] }
 0x7c5   : > { %s2062_s29 = sld [smem:[#allocation20_spill]] }
 0x7c9   : > { %p35_p0 = scmp.ge.s32.totalorder %s2060_s30, 4  }
 0x7ca   : > { %s2064_s28 = smov %s2061_s19 }
 0x7cb   :  { %37 = sbr.rel (!%p35_p0) target bundleno = 21 (0x15), region = 158 }
 0x7d0   :  { %1144 = vsyncpa [#allocation3], 1 }
 0x7d1   :  { %1146 = vsyncpa [#allocation3 + $0x1], 1 }
 0x7d2   :  { %1147 = vsyncpa [#allocation6], 1 }
 0x7d3   :  { %1149 = vsyncpa [#allocation6 + $0x1], 1 }
 0x7d4   :  { %1150 = vsyncpa [#allocation9], 1 }
 0x7d5   :  { %1151 = vsyncpa [#allocation4], 1 }
 0x7d6   :  { %1153 = vsyncpa [#allocation4 + $0x1], 1 }

</bundles_post_ra>
